<compile_context>
chip_gen: v6e
topology: v6e:2x2x1
jax: 0.10.0
libtpu: 0.0.40
codegen_flags: <defaults>
</compile_context>

<pallas_src>
import jax
import jax.numpy as jnp
from jax import lax
from jax.experimental import pallas as pl
from jax.experimental.pallas import tpu as pltpu


def _round_up(x: int, m: int) -> int:
    return ((x + m - 1) // m) * m


def _round_down(x: int, m: int) -> int:
    return (x // m) * m


def _vmem_capacity_bytes() -> int:
    try:
        return int(pltpu.get_tpu_info().vmem_capacity_bytes)
    except Exception:
        return 128 * 1024 * 1024  # v5e/v6e default


def _accumulate_slabs(x_ref, acc_ref, d_base):
    """acc_ref (TH,TW) f32 += sum_d x_ref[d] * (d_base + d), in 8-deep sub-slabs.

    Per-iteration temporaries are bounded by one (8, TH, TW) slab; no full
    (TD, TH, TW) f32 copy is ever materialized.
    """
    td = x_ref.shape[0]
    n_slabs = td // 8

    if n_slabs > 0:
        def slab(s, carry):
            start = pl.multiple_of(s * 8, 8)
            xs = x_ref[pl.ds(start, 8), :, :].astype(jnp.float32)        # (8,TH,TW)
            w = (d_base + start
                 + lax.broadcasted_iota(jnp.int32, (8, 1, 1), 0)).astype(jnp.float32)
            acc_ref[...] += jnp.sum(xs * w, axis=0)
            return carry

        lax.fori_loop(0, n_slabs, slab, 0, unroll=(n_slabs <= 16))

    # Static tail (td % 8 planes): per-d scalar-weighted FMA.
    for dd in range(8 * n_slabs, td):
        acc_ref[...] += x_ref[dd].astype(jnp.float32) * (d_base + dd)


def _dr_kernel_full_depth(x_ref, o_ref):
    # x_ref: (D, TH, TW) block (batch squeezed); o_ref: (TH, TW) f32 output.
    # Whole reduction in one grid step -> no scratch, no pl.when.
    o_ref[...] = jnp.zeros_like(o_ref)
    _accumulate_slabs(x_ref, o_ref, 0)


def _dr_kernel_split_depth(x_ref, o_ref, acc_ref):
    # x_ref: (TD, TH, TW); o_ref/acc_ref: (TH, TW) f32.  D is the innermost
    # ("arbitrary") grid axis; acc_ref stays resident across it.
    k = pl.program_id(3)

    @pl.when(k == 0)
    def _init():
        acc_ref[...] = jnp.zeros_like(acc_ref)

    _accumulate_slabs(x_ref, acc_ref, k * x_ref.shape[0])

    @pl.when(k == pl.num_programs(3) - 1)
    def _finalize():
        o_ref[...] = acc_ref[...]


def disparity_regression(x: jax.Array, *, block_budget_bytes: int | None = None) -> jax.Array:
    """x: (B, maxdisp, H, W) -> (B, H, W) float32 weighted disparity sum."""
    if x.dtype not in (jnp.float32, jnp.bfloat16):
        x = x.astype(jnp.float32)         # bf16 stays bf16 (halves HBM bytes)
    B, D, H, W = x.shape
    itemsize = x.dtype.itemsize
    sub = 16 if itemsize == 2 else 8      # bf16 packs 16 rows per sublane tile
    lane = 128

    vmem_cap = _vmem_capacity_bytes()
    budget = (block_budget_bytes if block_budget_bytes is not None
              else max(vmem_cap // 6, 1 << 20))   # input block budget (2 bufs + temps)

    # --- width tile: prefer full width (each (d,h) row contiguous in HBM) ----
    if 8 * sub * W * itemsize <= budget:
        TW = W
    else:
        TW = lane
        while 2 * TW * 8 * sub * itemsize <= budget and 2 * TW <= _round_up(W, lane):
            TW *= 2
        # Ragged last W block only touches out-of-range columns (masked on
        # writeback), so no padding copy is needed.

    # --- depth tile: prefer the whole reduction inside one grid step ---------
    full_depth = D * sub * TW * itemsize <= budget
    if full_depth:
        TD = D
    else:
        TD = min(D, max(8, _round_down(budget // (sub * TW * itemsize), 8)))
        if D % TD:
            # Rare (huge D*W): zero-pad D so every depth block is fully valid
            # (padded planes contribute weight * 0 = 0).
            x = jnp.pad(x, ((0, 0), (0, _round_up(D, TD) - D), (0, 0), (0, 0)))
            D = x.shape[1]

    # --- height tile: grow while the block fits and in-kernel temps stay small
    if H <= sub:
        TH = H                             # block dim == full dim is always legal
    else:
        TH = sub
        while (TH * 2 <= 256
               and TH * 2 <= _round_up(H, sub)
               and TD * (TH * 2) * TW * itemsize <= budget
               and (TH * 2) * TW * 4 <= 256 * 1024):
            TH *= 2
        # v7x megacore: keep >= 2 blocks on some "parallel" axis when B == 1.
        if B == 1 and pl.cdiv(H, TH) == 1 and pl.cdiv(W, TW) == 1 and TH > sub:
            TH = max(sub, _round_down(TH // 2, sub))

    out_shape = jax.ShapeDtypeStruct((B, H, W), jnp.float32)
    compiler_params = pltpu.CompilerParams(
        dimension_semantics=(("parallel", "parallel", "parallel")
                             if full_depth else
                             ("parallel", "parallel", "parallel", "arbitrary")),
        vmem_limit_bytes=(vmem_cap * 3) // 4,   # ~48 MiB on v7x, 96 MiB on v5e/v6e
    )

    if full_depth:
        grid = (B, pl.cdiv(H, TH), pl.cdiv(W, TW))
        grid_spec = pltpu.PrefetchScalarGridSpec(
            num_scalar_prefetch=0,
            grid=grid,
            in_specs=[pl.BlockSpec((pl.Squeezed(), D, TH, TW),
                                   lambda b, i, j: (b, 0, i, j))],
            out_specs=pl.BlockSpec((pl.Squeezed(), TH, TW),
                                   lambda b, i, j: (b, i, j)),
            scratch_shapes=[],
        )
        kernel = _dr_kernel_full_depth
    else:
        grid = (B, pl.cdiv(H, TH), pl.cdiv(W, TW), D // TD)
        grid_spec = pltpu.PrefetchScalarGridSpec(
            num_scalar_prefetch=0,
            grid=grid,
            in_specs=[pl.BlockSpec((pl.Squeezed(), TD, TH, TW),
                                   lambda b, i, j, k: (b, k, i, j))],
            out_specs=pl.BlockSpec((pl.Squeezed(), TH, TW),
                                   lambda b, i, j, k: (b, i, j)),
            scratch_shapes=[pltpu.VMEM((TH, TW), jnp.float32)],
        )
        kernel = _dr_kernel_split_depth

    # TODO(synk): a fused softmax(D)+regression variant (read the volume once)
    # would cut end-to-end HBM traffic ~3x in the full pipeline; it is outside
    # this module's forward semantics so it is not implemented here.
    return pl.pallas_call(
        kernel,
        out_shape=out_shape,
        grid_spec=grid_spec,
        compiler_params=compiler_params,
    )(x)


def disparity_regression_ref(x: jax.Array) -> jax.Array:
    # pure-JAX reference of the PyTorch forward
    D = x.shape[1]
    disp = jnp.arange(D, dtype=jnp.float32).reshape(1, D, 1, 1)
    return jnp.sum(x.astype(jnp.float32) * disp, axis=1)


if __name__ == "__main__":
    key = jax.random.PRNGKey(0)

    # Test 1: default (full-depth, no-reduction-axis) variant.
    B, maxdisp, H, W = 2, 8, 16, 16
    logits = jax.random.normal(key, (B, maxdisp, H, W), dtype=jnp.float32)
    x = jax.nn.softmax(logits, axis=1)       # typical cost-volume probabilities

    out = jax.block_until_ready(disparity_regression(x))
    ref = disparity_regression_ref(x)
    assert out.shape == (B, H, W), out.shape
    assert out.dtype == jnp.float32, out.dtype
    assert jnp.allclose(out, ref, atol=1e-5, rtol=1e-5), float(jnp.max(jnp.abs(out - ref)))

    # Test 2: force the split-depth accumulator variant with a tiny block
    # budget (exercises the D-reduction grid axis + scratch accumulator).
    maxdisp2 = 32
    logits2 = jax.random.normal(jax.random.PRNGKey(1), (B, maxdisp2, H, W), jnp.float32)
    x2 = jax.nn.softmax(logits2, axis=1)
    out2 = jax.block_until_ready(disparity_regression(x2, block_budget_bytes=4096))
    ref2 = disparity_regression_ref(x2)
    assert out2.shape == (B, H, W), out2.shape
    assert jnp.allclose(out2, ref2, atol=1e-4, rtol=1e-5), float(jnp.max(jnp.abs(out2 - ref2)))

    print("KERNEL_OK")
</pallas_src>

<mosaic_0001>
module attributes {stable_mosaic.version = 11 : i64} {
  func.func @_dr_kernel_full_depth(%arg0: i32, %arg1: i32, %arg2: i32, %arg3: memref<1x8x16x16xf32, #tpu.memory_space<vmem>>, %arg4: memref<1x16x16xf32, #tpu.memory_space<vmem>>) attributes {dimension_semantics = [#tpu.dimension_semantics<parallel>, #tpu.dimension_semantics<parallel>, #tpu.dimension_semantics<parallel>], iteration_bounds = array<i64: 2, 1, 1>, scalar_prefetch = 0 : i64, scratch_operands = 0 : i64, tpu.core_type = #tpu.core_type<tc>, window_params = [{transform_indices = @transform_0, window_bounds = array<i64: 1, 8, 16, 16>}, {transform_indices = @transform_1, window_bounds = array<i64: 1, 16, 16>}]} {
    %cst = arith.constant 0.000000e+00 : f32
    %0 = vector.broadcast %cst : f32 to vector<16x16xf32>
    %c0 = arith.constant 0 : index
    %c0_0 = arith.constant 0 : index
    %c0_1 = arith.constant 0 : index
    %1 = vector.load %arg4[%c0, %c0_0, %c0_1] : memref<1x16x16xf32, #tpu.memory_space<vmem>>, vector<1x16x16xf32>
    %2 = vector.shape_cast %1 : vector<1x16x16xf32> to vector<16x16xf32>
    %3 = vector.shape_cast %0 : vector<16x16xf32> to vector<1x16x16xf32>
    tpu.vector_store %arg4[%c0, %c0_0, %c0_1], %3 {strides = array<i32>} : memref<1x16x16xf32, #tpu.memory_space<vmem>>, vector<1x16x16xf32>,
    %c0_i32 = arith.constant 0 : i32
    %c8_i32 = arith.constant 8 : i32
    %4 = arith.muli %c0_i32, %c8_i32 : i32
    %5 = tpu.assume_multiple %4, 8 : i32
    %c0_2 = arith.constant 0 : index
    %6 = arith.index_cast %5 : i32 to index
    %c0_3 = arith.constant 0 : index
    %c0_4 = arith.constant 0 : index
    %7 = vector.load %arg3[%c0_2, %6, %c0_3, %c0_4] : memref<1x8x16x16xf32, #tpu.memory_space<vmem>>, vector<1x8x16x16xf32>
    %8 = vector.shape_cast %7 : vector<1x8x16x16xf32> to vector<8x16x16xf32>
    %c0_i32_5 = arith.constant 0 : i32
    %9 = arith.addi %c0_i32_5, %5 : i32
    %10 = tpu.iota {dimensions = array<i32: 0>} : vector<8x1x1xi32>
    %11 = vector.broadcast %9 : i32 to vector<8x1x1xi32>
    %12 = arith.addi %11, %10 : vector<8x1x1xi32>
    %13 = arith.sitofp %12 : vector<8x1x1xi32> to vector<8x1x1xf32>
    %c0_6 = arith.constant 0 : index
    %c0_7 = arith.constant 0 : index
    %c0_8 = arith.constant 0 : index
    %14 = vector.load %arg4[%c0_6, %c0_7, %c0_8] : memref<1x16x16xf32, #tpu.memory_space<vmem>>, vector<1x16x16xf32>
    %15 = vector.shape_cast %14 : vector<1x16x16xf32> to vector<16x16xf32>
    %16 = vector.broadcast %13 : vector<8x1x1xf32> to vector<8x16x16xf32>
    %17 = arith.mulf %8, %16 : vector<8x16x16xf32>
    %cst_9 = arith.constant dense<0.000000e+00> : vector<16x16xf32>
    %18 = vector.multi_reduction <add>, %17, %cst_9 [0] : vector<8x16x16xf32> to vector<16x16xf32>
    %19 = arith.addf %15, %18 : vector<16x16xf32>
    %c0_10 = arith.constant 0 : index
    %c0_11 = arith.constant 0 : index
    %c0_12 = arith.constant 0 : index
    %20 = vector.load %arg4[%c0_10, %c0_11, %c0_12] : memref<1x16x16xf32, #tpu.memory_space<vmem>>, vector<1x16x16xf32>
    %21 = vector.shape_cast %20 : vector<1x16x16xf32> to vector<16x16xf32>
    %22 = vector.shape_cast %19 : vector<16x16xf32> to vector<1x16x16xf32>
    tpu.vector_store %arg4[%c0_10, %c0_11, %c0_12], %22 {strides = array<i32>} : memref<1x16x16xf32, #tpu.memory_space<vmem>>, vector<1x16x16xf32>,
    %c1_i32 = arith.constant 1 : i32
    return
  }
  func.func @transform_0(%arg0: i32, %arg1: i32, %arg2: i32) -> (i32, i32, i32, i32) {
    %c0_i32 = arith.constant 0 : i32
    %c0_i32_0 = arith.constant 0 : i32
    return %arg0, %c0_i32, %arg1, %arg2 : i32, i32, i32, i32
  }
  func.func @transform_1(%arg0: i32, %arg1: i32, %arg2: i32) -> (i32, i32, i32) {
    %c0_i32 = arith.constant 0 : i32
    return %arg0, %arg1, %arg2 : i32, i32, i32
  }
}

</mosaic_0001>

<bundles_post_ra>
// kernel: tpu_custom_call.1
= control target key start
LH: loop header
LB: loop body
LE: loop exit
PB: predicated region body
PF: predicated region fallthrough
CT: control target
= control target key end

     0   :  { %6 = vsyncpa [#allocation3], 0  ;;  %s770_s0 = inlined_call_operand.hbm [shape: f32[2,8,16,16], index: 0, kind: input, shape index: {}]   ;;  %s771_s1 = inlined_call_operand.hbm [shape: f32[2,16,16], index: 1, kind: output, shape index: {}]  }
   0x1   :  { %8 = vsyncpa [#allocation3 + $0x1], 0 }
   0x2   :  { %9 = vsyncpa [#allocation4], 0 }
   0x3   :  { %11 = vsyncpa [#allocation4 + $0x1], 0  ;;  %s576_s6 = smov 0   ;;  %s578_s7 = smov 0  }
   0x4   :  { %s580_s8 = smov 0   ;;  %s582_s9 = smov 0  }
   0x5   :  { %s584_s10 = smov 0   ;;  %s586_s11 = smov 0  }
   0x6 LB: > { %s365_s12 = sadd.s32 4294967295, %s557_s11   ;;  %s366_s13 = sadd.s32 4294967294, %s557_s11   ;;  %s557_s11 = sphi %s586_s11, %s17_s11   ;;  %s553_s10 = sphi %s584_s10, %s782_s10   ;;  %s549_s9 = sphi %s582_s9, %s781_s9   ;;  %s545_s8 = sphi %s580_s8, %s780_s8   ;;  %s541_s7 = sphi %s578_s7, %s779_s7   ;;  %s537_s6 = sphi %s576_s6, %s778_s6  }
   0x7   : > { %s36_s14 = sadd.s32 1, %s553_s10  ;;  %s47_s15 = sadd.s32 1, %s545_s8 }
   0x8   : > { %p38_p0 = scmp.ge.s32.totalorder %s36_s14, 2  ;;  %p54_p1 = scmp.ne.s32.totalorder %s545_s8, %s541_s7 }
   0x9   : > { %p55_p2 = scmp.eq.s32.totalorder %s557_s11, 0  ;;  %p60_p3 = scmp.ne.s32.totalorder %s541_s7, %s537_s6 }
   0xa   : > { %s784_s14 = smov (%p38_p0, %s36_s14), 0  ;;  %p61_p5 = scmp.eq.s32.totalorder %s365_s12, 0 }
   0xb   : > { %p617_p4 = por %p55_p2, %p54_p1  ;;  %s40_s17 = ssub.s32 %s553_s10, %s784_s14 }
   0xc   : > { %p88_p6 = scmp.eq.s32.totalorder %s365_s12, 1  ;;  %p45_p7 = scmp.eq.s32.totalorder %s40_s17, 0 }
   0xd   : > { %p623_p8 = por %p61_p5, %p60_p3  ;;  %p94_p10 = scmp.eq.s32.totalorder %s366_s13, 1 }
   0xe   : > { %p627_p9 = por %p88_p6, %p54_p1  ;;  %p394_p13 = scmp.lt.s32.totalorder %s557_s11, 2 }
   0xf   : > { %s632_s20 = scalar_select %p45_p7, %s545_s8, %s47_s15  }
  0x10   : > { %p634_p11 = por %p94_p10, %p60_p3  ;;  %s114_s22 = sand.u32 1, %s545_s8  }
  0x11   : > { %s369_s23 = sshll.u32 %s114_s22, 7  ;;  %s380_s24 = sshll.u32 %s553_s10, 11 }
  0x12   : > { %s127_s27 = scalar_lea.hbm %s770_s0, %s380_s24  ;;  %s118_s28 = scalar_lea.vmem [#allocation2], %s369_s23 }
  0x13   : > { %s128_s29 = sshll.u32 %s118_s28, 4  ;;  %p647_p0 = pnand %p394_p13, %p617_p4  ;;  %s129_s29 = int_to_ptr.vmem [resolvable:$true] %s128_s29 }
  0x14   : > { %p372_p1 = scmp.ge.s32.totalorder %s557_s11, 1  ;;  %s115_s2 = scalar_lea.sflag [#allocation3], %s114_s22 }
  0x15   : > { %p451_p2 = pneg %p647_p0  ;;  %s462_s3 = scalar_lea.vmem %s129_s29, 2048 }
  0x16   : > { %p463_p3 = scmp.ne.s32.totalorder %s129_s29, %s462_s3  ;;  %s559_s4 = smov [#allocation2]  }
  0x17   : > { %s467_s5 = sshll.u32 %s559_s4, 4  ;;  %s468_s5 = int_to_ptr.vmem [resolvable:$false] %s467_s5 }
  0x18   : > { %p465_p5 = pnand %p463_p3, %p451_p2  ;;  %s469_s12 = scalar_lea.vmem %s468_s5, 4096 }
  0x19   : > { %p470_p7 = scmp.lt.s32.totalorder %s129_s29, %s468_s5  ;;  %p471_p10 = scmp.lt.s32.totalorder %s469_s12, %s462_s3 }
  0x1a   : > { %p466_p6 = pneg %p465_p5 }
  0x1b   : > { %p472_p12 = por %p471_p10, %p470_p7 }
  0x1d   : > { %p473_p4 = pnand %p472_p12, %p466_p6 }
  0x1f   : > { %476 = shalt.err (!%p473_p4)
}
  0x20   : > { %s560_s13 = smov 128   ;;  %s561_s15 = smov 8  }
  0x21   : > { %389 = dma.hbm_to_vmem [thread:$0]  (!%p647_p0), %s127_s27, 2048, %s129_s29, %s115_s2, %s560_s13, %s560_s13, %s561_s15  }
  0x22   : > { %p136_p13 = scmp.lt.s32.totalorder %s557_s11, 3 }
  0x24   : > { %p137_p2 = pnand %p372_p1, %p136_p13 }
  0x25   : > { %s660_s16 = sand.u32 (!%p137_p2), 1, %s541_s7  }
  0x26   : > { %140 = sbr.rel (%p137_p2) target bundleno = 81 (0x51), region = 24  ;;  %s373_s17 = sshll.u32 (!%p137_p2), %s660_s16, 7 }
  0x27   : > { %s143_s22 = scalar_lea.sflag (!%p137_p2), [#allocation3], %s660_s16  ;;  %s664_s23 = scalar_lea.vmem (!%p137_p2), [#allocation2], %s373_s17 }
  0x2b   : > { %528 = dma.done.wait (%p623_p8), %s143_s22, 2048  }
  0x2c   : > { %530 = vsyncadd (%p623_p8), %s143_s22, 4294965248  ;;  %s374_s24 = sshll.u32 %s660_s16, 4  ;;  %vm167_vm0 = vcmask 130048   ;;  %v562_v0 = vmov 0.0   ;;  %v172_v1 = vld [vmem:[%s664_s23] sm:$0xff]  ;;  %v174_v2 = vld [vmem:[%s664_s23 + $0x10] sm:$0xff] }
  0x2d   : > { %s671_s25 = scalar_lea.vmem [#allocation5], %s374_s24  ;;  %v176_v3 = vld [vmem:[%s664_s23 + $0x20] sm:$0xff]  ;;  %v178_v4 = vld [vmem:[%s664_s23 + $0x30] sm:$0xff]  ;;  %v206_v6 = vmul.f32 0.0, %v172_v1  ;;  %v223_v8 = vsel %vm167_vm0, %v174_v2, 0.0  ;;  %v173_v14 = vld [vmem:[%s664_s23 + $0x8] sm:$0xff] }
  0x2e   : > { %168 = vst.msk [vmem:[%s671_s25] sm:$0xff] %vm167_vm0, %v562_v0  ;;  %169 = vst.msk [vmem:[%s671_s25 + $0x8] sm:$0xff] %vm167_vm0, %v562_v0  ;;  %v180_v5 = vld [vmem:[%s664_s23 + $0x40] sm:$0xff]  ;;  %v210_v7 = vmul.f32 2.0, %v176_v3  ;;  %v182_v9 = vld [vmem:[%s664_s23 + $0x50] sm:$0xff]  ;;  %v212_v10 = vmul.f32 3.0, %v178_v4 }
  0x2f   : > { %v214_v11 = vmul.f32 4.0, %v180_v5  ;;  %v222_v12 = vsel %vm167_vm0, %v206_v6, 0.0  ;;  %v184_v15 = vld [vmem:[%s664_s23 + $0x60] sm:$0xff]  ;;  %v177_v17 = vld [vmem:[%s664_s23 + $0x28] sm:$0xff]  ;;  %v179_v18 = vld [vmem:[%s664_s23 + $0x38] sm:$0xff]  ;;  %v216_v19 = vmul.f32 5.0, %v182_v9 }
  0x30   : > { %v225_v13 = vsel %vm167_vm0, %v210_v7, 0.0  ;;  %v224_v16 = vadd.f32 %v223_v8, %v222_v12  ;;  %v227_v20 = vsel %vm167_vm0, %v212_v10, 0.0  ;;  %v175_v21 = vld [vmem:[%s664_s23 + $0x18] sm:$0xff]  ;;  %v181_v22 = vld [vmem:[%s664_s23 + $0x48] sm:$0xff]  ;;  %v207_v23 = vmul.f32 0.0, %v173_v14  ;;  %v186_v24 = vld [vmem:[%s664_s23 + $0x70] sm:$0xff] }
  0x31   : > { %v211_v26 = vmul.f32 2.0, %v177_v17  ;;  %v213_v27 = vmul.f32 3.0, %v179_v18  ;;  %v218_v28 = vmul.f32 6.0, %v184_v15  ;;  %v229_v29 = vsel %vm167_vm0, %v214_v11, 0.0  ;;  %v183_v30 = vld [vmem:[%s664_s23 + $0x58] sm:$0xff]  ;;  %v185_v38 = vld [vmem:[%s664_s23 + $0x68] sm:$0xff] }
  0x32   : > { %v226_v25 = vadd.f32 %v225_v13, %v224_v16  ;;  %v237_v31 = vsel %vm167_vm0, %v207_v23, 0.0  ;;  %v215_v33 = vmul.f32 4.0, %v181_v22  ;;  %v238_v34 = vsel %vm167_vm0, %v175_v21, 0.0  ;;  %v187_v44 = vld [vmem:[%s664_s23 + $0x78] sm:$0xff]  ;;  %s381_s18 = sshll.u32 %s549_s9, 8  ;;  %s273_s26 = sshll.u32 %s671_s25, 4  ;;  %s720_s26 = int_to_ptr.vmem [resolvable:$true] %s273_s26 }
  0x33   : > { %v240_v35 = vsel %vm167_vm0, %v211_v26, 0.0  ;;  %v220_v36 = vmul.f32 7.0, %v186_v24  ;;  %v231_v37 = vsel %vm167_vm0, %v216_v19, 0.0  ;;  %v239_v39 = vadd.f32 %v238_v34, %v237_v31  ;;  %s718_s29 = scalar_lea.hbm %s771_s1, %s381_s18  ;;  %s257_s30 = scalar_lea.sflag [#allocation4], %s660_s16 }
  0x34   : > { %v228_v32 = vadd.f32 %v227_v20, %v226_v25  ;;  %v217_v41 = vmul.f32 5.0, %v183_v30  ;;  %v242_v42 = vsel %vm167_vm0, %v213_v27, 0.0  ;;  %v233_v43 = vsel %vm167_vm0, %v218_v28, 0.0  ;;  %s477_s9 = scalar_lea.vmem %s720_s26, 256  ;;  %s563_s2 = smov [#allocation5]  }
  0x35   : > { %v241_v45 = vadd.f32 %v240_v35, %v239_v39  ;;  %v219_v47 = vmul.f32 6.0, %v185_v38  ;;  %v244_v48 = vsel %vm167_vm0, %v215_v33, 0.0  ;;  %v235_v49 = vsel %vm167_vm0, %v220_v36, 0.0  ;;  %v204_v54 = vld [vmem:[%s671_s25] sm:$0xff]  ;;  %v205_v62 = vld [vmem:[%s671_s25 + $0x8] sm:$0xff]  ;;  %p478_p8 = scmp.ne.s32.totalorder %s720_s26, %s477_s9  ;;  %s481_s3 = sshll.u32 %s563_s2, 4  ;;  %s482_s3 = int_to_ptr.vmem [resolvable:$false] %s481_s3 }
  0x36   : > { %v230_v40 = vadd.f32 %v229_v29, %v228_v32  ;;  %v221_v52 = vmul.f32 7.0, %v187_v44  ;;  %v246_v53 = vsel %vm167_vm0, %v217_v41, 0.0  ;;  %s483_s4 = scalar_lea.vmem %s482_s3, 512  ;;  %p484_p1 = scmp.lt.s32.totalorder %s720_s26, %s482_s3 }
  0x37   : > { %v243_v50 = vadd.f32 %v242_v42, %v241_v45  ;;  %v248_v57 = vsel %vm167_vm0, %v219_v47, 0.0  ;;  %p479_p12 = pnand %p478_p8, %p627_p9  ;;  %p485_p3 = scmp.lt.s32.totalorder %s483_s4, %s477_s9 }
  0x38   : > { %v232_v46 = vadd.f32 %v231_v37, %v230_v40  ;;  %v250_v60 = vsel %vm167_vm0, %v221_v52, 0.0 }
  0x39   : > { %v245_v55 = vadd.f32 %v244_v48, %v243_v50  ;;  %p480_p0 = pneg %p479_p12  ;;  %p486_p5 = por %p485_p3, %p484_p1 }
  0x3a   : > { %v234_v51 = vadd.f32 %v233_v43, %v232_v46 }
  0x3b   : > { %v247_v58 = vadd.f32 %v246_v53, %v245_v55  ;;  %p487_p6 = pnand %p486_p5, %p480_p0 }
  0x3c   : > { %v236_v56 = vadd.f32 %v235_v49, %v234_v51 }
  0x3d   : > { %v249_v61 = vadd.f32 %v248_v57, %v247_v58 }
  0x3e   : > { %v252_v59 = vadd.f32 %v236_v56, %v204_v54 }
  0x3f   : > { %v251_v63 = vadd.f32 %v250_v60, %v249_v61 }
  0x40   : > { %254 = vst.msk [vmem:[%s671_s25] sm:$0xff] %vm167_vm0, %v252_v59 }
  0x41   : > { %v253_v0 = vadd.f32 %v251_v63, %v205_v62 }
  0x43   : > { %255 = vst.msk [vmem:[%s671_s25 + $0x8] sm:$0xff] %vm167_vm0, %v253_v0 }
  0x44   : > { %490 = shalt.err (!%p487_p6)
}
  0x45   : > { %s491_s5 = scalar_lea.hbm %s718_s29, 256  ;;  %s495_s15 = scalar_lea.hbm %s771_s1, 512 }
  0x46   : > { %p492_p7 = scmp.ne.s32.totalorder %s718_s29, %s491_s5  ;;  %p496_p13 = scmp.lt.s32.totalorder %s718_s29, %s771_s1 }
  0x47   : > { %p497_p2 = scmp.lt.s32.totalorder %s495_s15, %s491_s5 }
  0x48   : > { %p493_p10 = pnand %p492_p7, %p627_p9 }
  0x49   : > { %p498_p8 = por %p497_p2, %p496_p13 }
  0x4a   : > { %p494_p4 = pneg %p493_p10 }
  0x4c   : > { %p499_p12 = pnand %p498_p8, %p494_p4 }
  0x4e   : > { %502 = shalt.err (!%p499_p12)
}
  0x4f   : > { %s564_s23 = smov 128   ;;  %s565_s24 = smov 8  }
  0x50   : > { %384 = dma.vmem_to_hbm [thread:$0]  (%p627_p9), %s720_s26, 256, %s718_s29, %s257_s30, %s564_s23, %s564_s23, %s565_s24  }
  0x51 PF: > { %s288_s25 = sand.u32 1, %s537_s6   ;;  %p777_p0 = scmp.ge.s32.totalorder %s557_s11, 2 }
  0x52   : > { %s289_s18 = scalar_lea.sflag [#allocation4], %s288_s25 }
  0x53   : > { %p391_p1 = pnand %p777_p0, %p634_p11 }
  0x55   : > { %p392_p3 = pneg %p391_p1 }
  0x57   : > { %532 = dma.done.wait (%p392_p3), %s289_s18, 256  }
  0x58   : > { %534 = vsyncadd (%p392_p3), %s289_s18, 4294967040  ;;  %s17_s11 = sadd.s32 1, %s557_s11   ;;  %s778_s6 = smov %s541_s7 }
  0x59   : > { %p14_p5 = scmp.ge.s32.totalorder %s17_s11, 4   ;;  %s779_s7 = smov %s545_s8 }
  0x5a   : > { %s780_s8 = smov %s632_s20  ;;  %s781_s9 = smov %s553_s10 }
  0x5b   : > { %s782_s10 = smov %s784_s14  ;;  %16 = sbr.rel (!%p14_p5) target bundleno = 6 (0x6), region = 70 }
  0x60   :  { %294 = vsyncpa [#allocation3], 1 }
  0x61   :  { %296 = vsyncpa [#allocation3 + $0x1], 1 }
  0x62   :  { %297 = vsyncpa [#allocation4], 1 }
  0x63   :  { %299 = vsyncpa [#allocation4 + $0x1], 1 }

</bundles_post_ra>
